<compile_context>
chip_gen: v6e
topology: v6e:2x2x1
jax: 0.10.0
libtpu: 0.0.40
codegen_flags: <defaults>
</compile_context>

<pallas_src>
import functools

import jax
import jax.numpy as jnp
from jax.experimental import pallas as pl
from jax.experimental.pallas import tpu as pltpu

_LANES = 128
_SUBLANES = 8
_MAX_BLOCK_ROWS = 8192            # (8192, 128) f32 block = 4 MiB per input/buffer
_FAST_PATH_ELEMS = 1 << 14        # below this, plain XLA beats kernel launch
_VMEM_LIMIT = 32 * 1024 * 1024    # 2 inputs x 2 buffers x 4 MiB = 16 MiB needed


def _num_tensorcores() -> int:
    """2 on dual-TensorCore chips (v7x), else 1 (v5e / v6e)."""
    try:
        kind = jax.devices()[0].device_kind.lower()
    except Exception:
        return 1
    return 2 if ("v7" in kind or "7x" in kind) else 1


def _round_up(x: int, m: int) -> int:
    return ((x + m - 1) // m) * m


def _l1_kernel(pred_ref, tgt_ref, partial_ref, acc_ref, *,
               rows: int, block_rows: int, steps_per_core: int,
               first_masked_block: int, virtual_blocks: int):
    c = pl.program_id(0)   # core shard axis
    i = pl.program_id(1)   # reduction axis (per core)
    vblock = c * steps_per_core + i

    @pl.when(i == 0)
    def _init():
        acc_ref[...] = jnp.zeros_like(acc_ref)

    # Upcast before subtract (v5e VPU has no bf16 ALU path); free for f32.
    diff = jnp.abs(pred_ref[...].astype(jnp.float32) -
                   tgt_ref[...].astype(jnp.float32))

    def fold(x):
        # Fold the block into an (8, 128) accumulator: pure VPU adds, no XLU.
        acc_ref[...] += x.reshape(block_rows // _SUBLANES, _SUBLANES,
                                  _LANES).sum(axis=0)

    def masked_fold():
        # Scalar row limit for this virtual block; <=0 for fully-duplicated
        # (clamped) blocks, partial for the ragged last block. Keep it a
        # select so OOB garbage (possibly NaN) never enters the accumulator.
        row_limit = rows - vblock * block_rows
        row_idx = jax.lax.broadcasted_iota(jnp.int32, diff.shape, 0)
        fold(jnp.where(row_idx < row_limit, diff, 0.0))

    if first_masked_block >= virtual_blocks:
        fold(diff)                      # no block overruns `rows`
    elif first_masked_block == 0:
        masked_fold()                   # every block needs the mask
    else:
        needs_mask = vblock >= first_masked_block

        @pl.when(needs_mask)
        def _tail():
            masked_fold()

        @pl.when(jnp.logical_not(needs_mask))
        def _body():
            fold(diff)

    # Epilogue: cross-sublane reduce in-kernel, emit a lane-dense partial.
    @pl.when(i == pl.num_programs(1) - 1)
    def _epilogue():
        partial_ref[...] = acc_ref[...].sum(
            axis=0, keepdims=True).reshape(partial_ref.shape)


def residual_loss(out: jax.Array, target: jax.Array) -> jax.Array:
    """Equivalent of nn.L1Loss()(out, target) with reduction='mean'."""
    assert out.shape == target.shape, "L1Loss requires matching shapes"
    n_elems = out.size
    in_dtype = out.dtype

    # Small-input fast path: XLA fuses abs-diff + mean into one pass anyway.
    if n_elems < _FAST_PATH_ELEMS:
        return jnp.mean(jnp.abs(out - target))

    flat_pred = out.reshape(-1)
    flat_tgt = target.reshape(-1)

    # Main lane-dense slab: largest prefix whose length is a multiple of 128.
    # The <=127-element remainder is reduced by XLA (no jnp.pad full copy).
    n_main = (n_elems // _LANES) * _LANES
    rows = n_main // _LANES
    if n_main < n_elems:
        main_pred, main_tgt = flat_pred[:n_main], flat_tgt[:n_main]
    else:
        main_pred, main_tgt = flat_pred, flat_tgt
    slab_pred = main_pred.reshape(rows, _LANES)
    slab_tgt = main_tgt.reshape(rows, _LANES)

    itemsize = jnp.dtype(in_dtype).itemsize
    sublane_mult = _SUBLANES * max(1, 4 // max(1, itemsize))   # 8/16/32
    block_rows = min(_MAX_BLOCK_ROWS, _round_up(rows, sublane_mult))

    total_blocks = pl.cdiv(rows, block_rows)
    num_cores = max(1, min(_num_tensorcores(), total_blocks))
    steps_per_core = pl.cdiv(total_blocks, num_cores)
    virtual_blocks = num_cores * steps_per_core
    # First virtual block whose row range extends past `rows`; duplicated
    # (clamped) blocks have a larger index and are fully masked in-kernel.
    first_masked_block = (rows // block_rows) if (rows % block_rows) else total_blocks

    if virtual_blocks == total_blocks:
        def in_map(c, i):
            return (c * steps_per_core + i, 0)
    else:
        last = total_blocks - 1

        def in_map(c, i):
            # Clamp duplicated trailing steps onto the last valid block; their
            # contribution is masked to zero inside the kernel.
            return (jnp.minimum(c * steps_per_core + i, last), 0)

    if num_cores > 1:
        dim_sems = (getattr(pltpu, "CORE_PARALLEL", "parallel"),
                    getattr(pltpu, "ARBITRARY", "arbitrary"))
    else:
        dim_sems = ("arbitrary", "arbitrary")

    kernel = functools.partial(
        _l1_kernel, rows=rows, block_rows=block_rows,
        steps_per_core=steps_per_core,
        first_masked_block=first_masked_block,
        virtual_blocks=virtual_blocks)

    partials = pl.pallas_call(
        kernel,
        out_shape=jax.ShapeDtypeStruct((num_cores, 1, _LANES), jnp.float32),
        grid_spec=pltpu.PrefetchScalarGridSpec(
            num_scalar_prefetch=0,
            grid=(num_cores, steps_per_core),
            in_specs=[
                pl.BlockSpec((block_rows, _LANES), in_map),
                pl.BlockSpec((block_rows, _LANES), in_map),
            ],
            out_specs=pl.BlockSpec((1, 1, _LANES), lambda c, i: (c, 0, 0)),
            scratch_shapes=[pltpu.VMEM((_SUBLANES, _LANES), jnp.float32)],
        ),
        compiler_params=pltpu.CompilerParams(
            dimension_semantics=dim_sems,
            vmem_limit_bytes=_VMEM_LIMIT,
        ),
        cost_estimate=pl.CostEstimate(
            flops=3 * n_main,
            transcendentals=0,
            bytes_accessed=2 * n_main * itemsize + num_cores * _LANES * 4),
    )(slab_pred, slab_tgt)

    total = jnp.sum(partials)
    if n_main < n_elems:
        total = total + jnp.sum(
            jnp.abs(flat_pred[n_main:].astype(jnp.float32) -
                    flat_tgt[n_main:].astype(jnp.float32)))
    return (total / n_elems).astype(in_dtype)


if __name__ == "__main__":
    key = jax.random.PRNGKey(0)
    cases = [
        (2, 4, 16, 16),       # module-typical small shape (XLA fast path)
        (2, 4, 63, 65),       # not a multiple of 128 -> kernel + XLA tail
        (2, 8, 32, 128),      # aligned -> single-block kernel path, no mask
        (8, 16, 129, 130),    # multi-step grid + gated ragged-row masking
    ]
    for shape in cases:
        key, k1, k2 = jax.random.split(key, 3)
        pred = jax.random.normal(k1, shape, dtype=jnp.float32)
        tgt = jax.random.normal(k2, shape, dtype=jnp.float32)

        loss = residual_loss(pred, tgt)
        jax.block_until_ready(loss)

        ref = jnp.mean(jnp.abs(pred - tgt))
        assert bool(jnp.allclose(loss, ref, rtol=1e-4, atol=1e-6)), (shape, loss, ref)

    print("KERNEL_OK")
</pallas_src>

<mosaic_0001>
module attributes {stable_mosaic.version = 11 : i64} {
  func.func @_l1_kernel(%arg0: i32, %arg1: i32, %arg2: memref<256x128xf32, #tpu.memory_space<vmem>>, %arg3: memref<256x128xf32, #tpu.memory_space<vmem>>, %arg4: memref<1x1x128xf32, #tpu.memory_space<vmem>>, %arg5: memref<8x128xf32, #tpu.memory_space<vmem>>) attributes {dimension_semantics = [#tpu.dimension_semantics<arbitrary>, #tpu.dimension_semantics<arbitrary>], iteration_bounds = array<i64: 1, 1>, scalar_prefetch = 0 : i64, scratch_operands = 1 : i64, tpu.core_type = #tpu.core_type<tc>, window_params = [{transform_indices = @transform_0, window_bounds = array<i64: 256, 128>}, {transform_indices = @transform_1, window_bounds = array<i64: 256, 128>}, {transform_indices = @transform_2, window_bounds = array<i64: 1, 1, 128>}]} {
    %c1_i32 = arith.constant 1 : i32
    %0 = arith.muli %arg0, %c1_i32 : i32
    %1 = arith.addi %0, %arg1 : i32
    %c0_i32 = arith.constant 0 : i32
    %2 = arith.cmpi eq, %arg1, %c0_i32 : i32
    %3 = arith.extui %2 : i1 to i32
    %c0_i32_0 = arith.constant 0 : i32
    %4 = arith.cmpi ne, %3, %c0_i32_0 : i32
    scf.if %4 {
      %cst_11 = arith.constant 0.000000e+00 : f32
      %24 = vector.broadcast %cst_11 : f32 to vector<8x128xf32>
      %c0_12 = arith.constant 0 : index
      %c0_13 = arith.constant 0 : index
      %25 = vector.load %arg5[%c0_12, %c0_13] : memref<8x128xf32, #tpu.memory_space<vmem>>, vector<8x128xf32>
      tpu.vector_store %arg5[%c0_12, %c0_13], %24 {strides = array<i32>} : memref<8x128xf32, #tpu.memory_space<vmem>>, vector<8x128xf32>,
    } else {
    }
    %c0 = arith.constant 0 : index
    %c0_1 = arith.constant 0 : index
    %5 = vector.load %arg2[%c0, %c0_1] : memref<256x128xf32, #tpu.memory_space<vmem>>, vector<256x128xf32>
    %c0_2 = arith.constant 0 : index
    %c0_3 = arith.constant 0 : index
    %6 = vector.load %arg3[%c0_2, %c0_3] : memref<256x128xf32, #tpu.memory_space<vmem>>, vector<256x128xf32>
    %7 = arith.subf %5, %6 : vector<256x128xf32>
    %8 = math.absf %7 : vector<256x128xf32>
    %c256_i32 = arith.constant 256 : i32
    %9 = arith.muli %1, %c256_i32 : i32
    %c255_i32 = arith.constant 255 : i32
    %10 = arith.subi %c255_i32, %9 : i32
    %11 = tpu.iota {dimensions = array<i32: 0>} : vector<256x128xi32>
    %12 = vector.broadcast %10 : i32 to vector<256x128xi32>
    %13 = arith.cmpi slt, %11, %12 : vector<256x128xi32>
    %cst = arith.constant 0.000000e+00 : f32
    %14 = vector.broadcast %cst : f32 to vector<256x128xf32>
    %15 = arith.select %13, %8, %14 : vector<256x128xi1>, vector<256x128xf32>
    %c0_4 = arith.constant 0 : index
    %c0_5 = arith.constant 0 : index
    %16 = vector.load %arg5[%c0_4, %c0_5] : memref<8x128xf32, #tpu.memory_space<vmem>>, vector<8x128xf32>
    %17 = vector.shape_cast %15 : vector<256x128xf32> to vector<32x8x128xf32>
    %cst_6 = arith.constant dense<0.000000e+00> : vector<8x128xf32>
    %18 = vector.multi_reduction <add>, %17, %cst_6 [0] : vector<32x8x128xf32> to vector<8x128xf32>
    %19 = arith.addf %16, %18 : vector<8x128xf32>
    %c0_7 = arith.constant 0 : index
    %c0_8 = arith.constant 0 : index
    %20 = vector.load %arg5[%c0_7, %c0_8] : memref<8x128xf32, #tpu.memory_space<vmem>>, vector<8x128xf32>
    tpu.vector_store %arg5[%c0_7, %c0_8], %19 {strides = array<i32>} : memref<8x128xf32, #tpu.memory_space<vmem>>, vector<8x128xf32>,
    %c0_i32_9 = arith.constant 0 : i32
    %21 = arith.cmpi eq, %arg1, %c0_i32_9 : i32
    %22 = arith.extui %21 : i1 to i32
    %c0_i32_10 = arith.constant 0 : i32
    %23 = arith.cmpi ne, %22, %c0_i32_10 : i32
    scf.if %23 {
      %c0_11 = arith.constant 0 : index
      %c0_12 = arith.constant 0 : index
      %24 = vector.load %arg5[%c0_11, %c0_12] : memref<8x128xf32, #tpu.memory_space<vmem>>, vector<8x128xf32>
      %cst_13 = arith.constant dense<0.000000e+00> : vector<128xf32>
      %25 = vector.multi_reduction <add>, %24, %cst_13 [0] : vector<8x128xf32> to vector<128xf32>
      %26 = vector.shape_cast %25 : vector<128xf32> to vector<1x128xf32>
      %27 = vector.shape_cast %26 : vector<1x128xf32> to vector<1x1x128xf32>
      %c0_14 = arith.constant 0 : index
      %c0_15 = arith.constant 0 : index
      %c0_16 = arith.constant 0 : index
      %28 = vector.load %arg4[%c0_14, %c0_15, %c0_16] : memref<1x1x128xf32, #tpu.memory_space<vmem>>, vector<1x1x128xf32>
      tpu.vector_store %arg4[%c0_14, %c0_15, %c0_16], %27 {strides = array<i32>} : memref<1x1x128xf32, #tpu.memory_space<vmem>>, vector<1x1x128xf32>,
    } else {
    }
    return
  }
  func.func @transform_0(%arg0: i32, %arg1: i32) -> (i32, i32) {
    %c1_i32 = arith.constant 1 : i32
    %0 = arith.muli %arg0, %c1_i32 : i32
    %1 = arith.addi %0, %arg1 : i32
    %c0_i32 = arith.constant 0 : i32
    %c0_i32_0 = arith.constant 0 : i32
    return %1, %c0_i32 : i32, i32
  }
  func.func @transform_1(%arg0: i32, %arg1: i32) -> (i32, i32) {
    %c1_i32 = arith.constant 1 : i32
    %0 = arith.muli %arg0, %c1_i32 : i32
    %1 = arith.addi %0, %arg1 : i32
    %c0_i32 = arith.constant 0 : i32
    %c0_i32_0 = arith.constant 0 : i32
    return %1, %c0_i32 : i32, i32
  }
  func.func @transform_2(%arg0: i32, %arg1: i32) -> (i32, i32, i32) {
    %c0_i32 = arith.constant 0 : i32
    %c0_i32_0 = arith.constant 0 : i32
    %c0_i32_1 = arith.constant 0 : i32
    return %arg0, %c0_i32, %c0_i32_0 : i32, i32, i32
  }
}

</mosaic_0001>

<bundles_post_ra>
// kernel: tpu_custom_call.1
= control target key start
LH: loop header
LB: loop body
LE: loop exit
PB: predicated region body
PF: predicated region fallthrough
CT: control target
= control target key end

     0   :  { %7 = vsyncpa [#allocation4], 0  ;;  %s447_s0 = inlined_call_operand.hbm [shape: f32[255,128], index: 0, kind: input, shape index: {}]   ;;  %s448_s1 = inlined_call_operand.hbm [shape: f32[255,128], index: 1, kind: input, shape index: {}]   ;;  %s449_s2 = inlined_call_operand.hbm [shape: f32[1,1,128], index: 2, kind: output, shape index: {}]  }
   0x1   :  { %8 = vsyncpa [#allocation7], 0 }
   0x2   :  { %9 = vsyncpa [#allocation5], 0  ;;  %s418_s9 = smov [#allocation3]  }
   0x3   :  { %s19_s10 = sshll.u32 %s418_s9, 4  ;;  %s20_s10 = int_to_ptr.vmem [resolvable:$true] %s19_s10 }
   0x4   :  { %s360_s11 = scalar_lea.vmem %s20_s10, 4096  ;;  %p365_p1 = scmp.lt.s32.totalorder %s20_s10, %s20_s10 }
   0x5   :  { %p361_p0 = scmp.ne.s32.totalorder %s20_s10, %s360_s11  ;;  %p366_p2 = scmp.lt.s32.totalorder %s360_s11, %s360_s11 }
   0x7   :  { %p367_p3 = por %p366_p2, %p365_p1 }
   0x9   :  { %p368_p4 = pnand %p367_p3, %p361_p0 }
   0xb   :  { %371 = shalt.err (!%p368_p4)
}
   0xc   :  { %s419_s12 = smov 128   ;;  %s420_s13 = smov 8  }
   0xd   :  { %25 = dma.hbm_to_vmem [thread:$0]  %s447_s0, 4096, %s20_s10, [#allocation4], %s419_s12, %s419_s12, %s420_s13  }
   0xe   :  { %s421_s16 = smov [#allocation6]  }
   0xf   :  { %s35_s17 = sshll.u32 %s421_s16, 4  ;;  %s36_s17 = int_to_ptr.vmem [resolvable:$true] %s35_s17 }
  0x10   :  { %s380_s18 = scalar_lea.vmem %s36_s17, 4096  ;;  %p385_p6 = scmp.lt.s32.totalorder %s36_s17, %s36_s17 }
  0x11   :  { %p381_p5 = scmp.ne.s32.totalorder %s36_s17, %s380_s18  ;;  %p386_p7 = scmp.lt.s32.totalorder %s380_s18, %s380_s18 }
  0x13   :  { %p387_p8 = por %p386_p7, %p385_p6 }
  0x15   :  { %p388_p9 = pnand %p387_p8, %p381_p5 }
  0x17   :  { %391 = shalt.err (!%p388_p9)
}
  0x18   :  { %41 = dma.hbm_to_vmem [thread:$0]  %s448_s1, 4096, %s36_s17, [#allocation7], %s419_s12, %s419_s12, %s420_s13  }
  0x19   :  { %412 = dma.done.wait [#allocation4], 4096  }
  0x1a   :  { %413 = vsyncadd [#allocation4], 4294963200 }
  0x1b   :  { %414 = dma.done.wait [#allocation7], 4096  }
  0x1c   :  { %415 = vsyncadd [#allocation7], 4294963200  ;;  %v58_v0 = vld [vmem:[#allocation3] sm:$0xff]  ;;  %v59_v1 = vld [vmem:[#allocation3 + $0x8] sm:$0xff]  ;;  %s422_s0 = smov [#allocation8]  }
  0x1d   :  { %v90_v2 = vld [vmem:[#allocation6] sm:$0xff]  ;;  %v91_v3 = vld [vmem:[#allocation6 + $0x8] sm:$0xff]  ;;  %v60_v4 = vld [vmem:[#allocation3 + $0x10] sm:$0xff]  ;;  %s337_s1 = sshll.u32 %s422_s0, 4  ;;  %s338_s1 = int_to_ptr.vmem [resolvable:$true] %s337_s1 }
  0x1e   :  { %v92_v5 = vld [vmem:[#allocation6 + $0x10] sm:$0xff]  ;;  %v122_v6 = vsub.f32 %v58_v0, %v90_v2  ;;  %v123_v7 = vsub.f32 %v59_v1, %v91_v3  ;;  %v61_v8 = vld [vmem:[#allocation3 + $0x18] sm:$0xff]  ;;  %v62_v11 = vld [vmem:[#allocation3 + $0x20] sm:$0xff]  ;;  %s392_s21 = scalar_lea.vmem %s338_s1, 16  ;;  %s396_s22 = scalar_lea.vmem %s338_s1, 32 }
  0x1f   :  { %v93_v9 = vld [vmem:[#allocation6 + $0x18] sm:$0xff]  ;;  %v124_v10 = vsub.f32 %v60_v4, %v92_v5  ;;  %v94_v12 = vld [vmem:[#allocation6 + $0x20] sm:$0xff]  ;;  %v63_v16 = vld [vmem:[#allocation3 + $0x28] sm:$0xff]  ;;  %p393_p10 = scmp.ne.s32.totalorder %s338_s1, %s392_s21  ;;  %p397_p11 = scmp.lt.s32.totalorder %s338_s1, %s338_s1 }
  0x20   :  { %v125_v13 = vsub.f32 %v61_v8, %v93_v9  ;;  %v154_v14 = vand.u32 2147483647, %v122_v6  ;;  %v155_v15 = vand.u32 2147483647, %v123_v7  ;;  %v95_v17 = vld [vmem:[#allocation6 + $0x28] sm:$0xff]  ;;  %v126_v18 = vsub.f32 %v62_v11, %v94_v12  ;;  %v64_v20 = vld [vmem:[#allocation3 + $0x30] sm:$0xff]  ;;  %p398_p12 = scmp.lt.s32.totalorder %s396_s22, %s392_s21 }
  0x21   :  { %v156_v19 = vand.u32 2147483647, %v124_v10  ;;  %v96_v21 = vld [vmem:[#allocation6 + $0x30] sm:$0xff]  ;;  %v127_v22 = vsub.f32 %v63_v16, %v95_v17  ;;  %v65_v25 = vld [vmem:[#allocation3 + $0x38] sm:$0xff]  ;;  %v66_v30 = vld [vmem:[#allocation3 + $0x40] sm:$0xff] }
  0x22   :  { %v157_v23 = vand.u32 2147483647, %v125_v13  ;;  %v287_v24 = vadd.f32 %v155_v15, %v154_v14  ;;  %v97_v26 = vld [vmem:[#allocation6 + $0x38] sm:$0xff]  ;;  %v128_v27 = vsub.f32 %v64_v20, %v96_v21  ;;  %v158_v28 = vand.u32 2147483647, %v126_v18  ;;  %v98_v31 = vld [vmem:[#allocation6 + $0x40] sm:$0xff]  ;;  %p399_p13 = por %p398_p12, %p397_p11 }
  0x23   :  { %v129_v32 = vsub.f32 %v65_v25, %v97_v26  ;;  %v159_v33 = vand.u32 2147483647, %v127_v22  ;;  %v67_v35 = vld [vmem:[#allocation3 + $0x48] sm:$0xff]  ;;  %v130_v37 = vsub.f32 %v66_v30, %v98_v31  ;;  %v68_v40 = vld [vmem:[#allocation3 + $0x50] sm:$0xff]  ;;  %v69_v45 = vld [vmem:[#allocation3 + $0x58] sm:$0xff] }
  0x24   :  { %v288_v29 = vadd.f32 %v287_v24, %v156_v19  ;;  %v99_v36 = vld [vmem:[#allocation6 + $0x48] sm:$0xff]  ;;  %v160_v38 = vand.u32 2147483647, %v128_v27  ;;  %v100_v41 = vld [vmem:[#allocation6 + $0x50] sm:$0xff]  ;;  %v101_v46 = vld [vmem:[#allocation6 + $0x58] sm:$0xff]  ;;  %p400_p0 = pnand %p399_p13, %p393_p10 }
  0x25   :  { %v131_v42 = vsub.f32 %v67_v35, %v99_v36  ;;  %v161_v43 = vand.u32 2147483647, %v129_v32  ;;  %v132_v47 = vsub.f32 %v68_v40, %v100_v41  ;;  %v162_v48 = vand.u32 2147483647, %v130_v37  ;;  %v70_v50 = vld [vmem:[#allocation3 + $0x60] sm:$0xff]  ;;  %v71_v55 = vld [vmem:[#allocation3 + $0x68] sm:$0xff] }
  0x26   :  { %v289_v34 = vadd.f32 %v288_v29, %v157_v23  ;;  %v102_v51 = vld [vmem:[#allocation6 + $0x60] sm:$0xff]  ;;  %v133_v52 = vsub.f32 %v69_v45, %v101_v46  ;;  %v103_v56 = vld [vmem:[#allocation6 + $0x68] sm:$0xff]  ;;  %v72_v60 = vld [vmem:[#allocation3 + $0x70] sm:$0xff] }
  0x27   :  { %v163_v53 = vand.u32 2147483647, %v131_v42  ;;  %v134_v57 = vsub.f32 %v70_v50, %v102_v51  ;;  %v164_v58 = vand.u32 2147483647, %v132_v47  ;;  %v104_v61 = vld [vmem:[#allocation6 + $0x70] sm:$0xff]  ;;  %v135_v62 = vsub.f32 %v71_v55, %v103_v56  ;;  %v73_v1 = vld [vmem:[#allocation3 + $0x78] sm:$0xff] }
  0x28   :  { %v290_v39 = vadd.f32 %v289_v34, %v158_v28  ;;  %v165_v63 = vand.u32 2147483647, %v133_v52  ;;  %v105_v2 = vld [vmem:[#allocation6 + $0x78] sm:$0xff]  ;;  %v136_v3 = vsub.f32 %v72_v60, %v104_v61  ;;  %v74_v6 = vld [vmem:[#allocation3 + $0x80] sm:$0xff]  ;;  %v75_v11 = vld [vmem:[#allocation3 + $0x88] sm:$0xff] }
  0x29   :  { %v166_v4 = vand.u32 2147483647, %v134_v57  ;;  %v106_v7 = vld [vmem:[#allocation6 + $0x80] sm:$0xff]  ;;  %v137_v8 = vsub.f32 %v73_v1, %v105_v2  ;;  %v167_v9 = vand.u32 2147483647, %v135_v62  ;;  %v107_v12 = vld [vmem:[#allocation6 + $0x88] sm:$0xff]  ;;  %v188_v1 = vlaneseq }
  0x2a   :  { %v291_v44 = vadd.f32 %v290_v39, %v159_v33  ;;  %v138_v13 = vsub.f32 %v74_v6, %v106_v7  ;;  %v168_v14 = vand.u32 2147483647, %v136_v3  ;;  %v76_v16 = vld [vmem:[#allocation3 + $0x90] sm:$0xff]  ;;  %v139_v18 = vsub.f32 %v75_v11, %v107_v12  ;;  %v77_v21 = vld [vmem:[#allocation3 + $0x98] sm:$0xff]  ;;  %v78_v26 = vld [vmem:[#allocation3 + $0xa0] sm:$0xff] }
  0x2b   :  { %v108_v17 = vld [vmem:[#allocation6 + $0x90] sm:$0xff]  ;;  %v169_v19 = vand.u32 2147483647, %v137_v8  ;;  %v109_v22 = vld [vmem:[#allocation6 + $0x98] sm:$0xff]  ;;  %v110_v27 = vld [vmem:[#allocation6 + $0xa0] sm:$0xff] }
  0x2c   :  { %v292_v49 = vadd.f32 %v291_v44, %v160_v38  ;;  %v140_v23 = vsub.f32 %v76_v16, %v108_v17  ;;  %v170_v24 = vand.u32 2147483647, %v138_v13  ;;  %v141_v28 = vsub.f32 %v77_v21, %v109_v22  ;;  %v79_v31 = vld [vmem:[#allocation3 + $0xa8] sm:$0xff]  ;;  %v80_v36 = vld [vmem:[#allocation3 + $0xb0] sm:$0xff]  ;;  %v81_v41 = vld [vmem:[#allocation3 + $0xb8] sm:$0xff] }
  0x2d   :  { %v171_v29 = vand.u32 2147483647, %v139_v18  ;;  %v111_v32 = vld [vmem:[#allocation6 + $0xa8] sm:$0xff]  ;;  %v142_v33 = vsub.f32 %v78_v26, %v110_v27  ;;  %v112_v37 = vld [vmem:[#allocation6 + $0xb0] sm:$0xff]  ;;  %v113_v42 = vld [vmem:[#allocation6 + $0xb8] sm:$0xff] }
  0x2e   :  { %v293_v54 = vadd.f32 %v292_v49, %v161_v43  ;;  %v172_v34 = vand.u32 2147483647, %v140_v23  ;;  %v143_v38 = vsub.f32 %v79_v31, %v111_v32  ;;  %v173_v39 = vand.u32 2147483647, %v141_v28  ;;  %v82_v46 = vld [vmem:[#allocation3 + $0xc0] sm:$0xff]  ;;  %v83_v51 = vld [vmem:[#allocation3 + $0xc8] sm:$0xff] }
  0x2f   :  { %v144_v43 = vsub.f32 %v80_v36, %v112_v37  ;;  %v174_v44 = vand.u32 2147483647, %v142_v33  ;;  %v114_v47 = vld [vmem:[#allocation6 + $0xc0] sm:$0xff]  ;;  %v115_v52 = vld [vmem:[#allocation6 + $0xc8] sm:$0xff]  ;;  %v84_v56 = vld [vmem:[#allocation3 + $0xd0] sm:$0xff] }
  0x30   :  { %v294_v59 = vadd.f32 %v293_v54, %v162_v48  ;;  %v145_v48 = vsub.f32 %v81_v41, %v113_v42  ;;  %v175_v49 = vand.u32 2147483647, %v143_v38  ;;  %v116_v57 = vld [vmem:[#allocation6 + $0xd0] sm:$0xff]  ;;  %v85_v61 = vld [vmem:[#allocation3 + $0xd8] sm:$0xff]  ;;  %v86_v3 = vld [vmem:[#allocation3 + $0xe0] sm:$0xff] }
  0x31   :  { %v176_v54 = vand.u32 2147483647, %v144_v43  ;;  %v117_v62 = vld [vmem:[#allocation6 + $0xd8] sm:$0xff]  ;;  %v87_v8 = vld [vmem:[#allocation3 + $0xe8] sm:$0xff]  ;;  %v88_v16 = vld [vmem:[#allocation3 + $0xf0] sm:$0xff] }
  0x32   :  { %v295_v0 = vadd.f32 %v294_v59, %v163_v53  ;;  %v146_v53 = vsub.f32 %v82_v46, %v114_v47  ;;  %v177_v59 = vand.u32 2147483647, %v145_v48  ;;  %v121_v11 = vld [vmem:[#allocation6 + $0xf8] sm:$0xff]  ;;  %v120_v17 = vld [vmem:[#allocation6 + $0xf0] sm:$0xff] }
  0x33   :  { %v152_v22 = vsub.f32 %v88_v16, %v120_v17 }
  0x34   :  { %v296_v5 = vadd.f32 %v295_v0, %v164_v58  ;;  %v147_v58 = vsub.f32 %v83_v51, %v115_v52  ;;  %v178_v0 = vand.u32 2147483647, %v146_v53 }
  0x36   :  { %v297_v10 = vadd.f32 %v296_v5, %v165_v63  ;;  %v148_v63 = vsub.f32 %v84_v56, %v116_v57  ;;  %v149_v5 = vsub.f32 %v85_v61, %v117_v62  ;;  %v179_v6 = vand.u32 2147483647, %v147_v58 }
  0x38   :  { %v298_v15 = vadd.f32 %v297_v10, %v166_v4  ;;  %v118_v4 = vld [vmem:[#allocation6 + $0xe0] sm:$0xff]  ;;  %v89_v10 = vld [vmem:[#allocation3 + $0xf8] sm:$0xff]  ;;  %v180_v13 = vand.u32 2147483647, %v148_v63 }
  0x39   :  { %v150_v12 = vsub.f32 %v86_v3, %v118_v4  ;;  %v153_v21 = vsub.f32 %v89_v10, %v121_v11 }
  0x3a   :  { %v299_v20 = vadd.f32 %v298_v15, %v167_v9  ;;  %v119_v9 = vld [vmem:[#allocation6 + $0xe8] sm:$0xff] }
  0x3b   :  { %v151_v18 = vsub.f32 %v87_v8, %v119_v9  ;;  %v182_v23 = vand.u32 2147483647, %v150_v12  ;;  %v185_v28 = vand.u32 2147483647, %v153_v21 }
  0x3c   :  { %v300_v25 = vadd.f32 %v299_v20, %v168_v14  ;;  %v189_v14 = vshrl.u32 %v188_v1, 7 }
  0x3d   :  { %v183_v26 = vand.u32 2147483647, %v151_v18 }
  0x3e   :  { %v301_v30 = vadd.f32 %v300_v25, %v169_v19  ;;  %v181_v19 = vand.u32 2147483647, %v149_v5 }
  0x40   :  { %v302_v35 = vadd.f32 %v301_v30, %v170_v24  ;;  %v220_v24 = vadd.s32 248, %v189_v14 }
  0x42   :  { %v303_v40 = vadd.f32 %v302_v35, %v171_v29  ;;  %v184_v29 = vand.u32 2147483647, %v152_v22  ;;  %vm253_vm0 = vcmp.lt.s32.totalorder %v220_v24, 255 }
  0x43   :  { %v285_v32 = vsel %vm253_vm0, %v185_v28, 0.0 }
  0x44   :  { %v304_v45 = vadd.f32 %v303_v40, %v172_v34 }
  0x46   :  { %v305_v50 = vadd.f32 %v304_v45, %v173_v39 }
  0x48   :  { %v306_v55 = vadd.f32 %v305_v50, %v174_v44 }
  0x4a   :  { %v307_v60 = vadd.f32 %v306_v55, %v175_v49 }
  0x4c   :  { %v308_v2 = vadd.f32 %v307_v60, %v176_v54 }
  0x4e   :  { %v309_v7 = vadd.f32 %v308_v2, %v177_v59 }
  0x50   :  { %v310_v15 = vadd.f32 %v309_v7, %v178_v0 }
  0x52   :  { %v311_v20 = vadd.f32 %v310_v15, %v179_v6 }
  0x54   :  { %v312_v25 = vadd.f32 %v311_v20, %v180_v13 }
  0x56   :  { %v313_v27 = vadd.f32 %v312_v25, %v181_v19 }
  0x58   :  { %v314_v30 = vadd.f32 %v313_v27, %v182_v23 }
  0x5a   :  { %v315_v31 = vadd.f32 %v314_v30, %v183_v26 }
  0x5c   :  { %v316_v33 = vadd.f32 %v315_v31, %v184_v29 }
  0x5e   :  { %v317_v34 = vadd.f32 %v316_v33, %v285_v32 }
  0x60   :  { %v324_v35 = vrot.slane %v317_v34, 4 }
  0x62   :  { %v325_v36 = vadd.f32 %v324_v35, %v317_v34 }
  0x64   :  { %v326_v37 = vrot.slane %v325_v36, 2 }
  0x66   :  { %v327_v38 = vadd.f32 %v326_v37, %v325_v36 }
  0x68   :  { %v328_v39 = vrot.slane %v327_v38, 1 }
  0x6a   :  { %v329_v40 = vadd.f32 %v328_v39, %v327_v38 }
  0x6c   :  { %330 = vst [vmem:[#allocation8] sm:$0x1] %v329_v40 }
  0x6d   :  { %403 = shalt.err (!%p400_p0)
}
  0x6e   :  { %340 = dma.vmem_to_hbm [thread:$0]  %s338_s1, 16, %s449_s2, [#allocation5]  }
  0x6f   :  { %416 = dma.done.wait [#allocation5], 16  }
  0x70   :  { %417 = vsyncadd [#allocation5], 4294967280 }
  0x71   :  { %344 = vsyncpa [#allocation4], 1 }
  0x72   :  { %345 = vsyncpa [#allocation7], 1 }
  0x73   :  { %346 = vsyncpa [#allocation5], 1 }

</bundles_post_ra>
